<compile_context>
chip_gen: v7x
topology: tpu7x:2x2x1
jax: 0.10.0
libtpu: 0.0.40
codegen_flags: <defaults>
</compile_context>

<pallas_src>
import jax
import jax.numpy as jnp
from jax.experimental import pallas as pl
from jax.experimental.pallas import tpu as pltpu


# ----------------------------------------------------------------------------
# Kernel 1: text-encoder linear + duration predictor (fused), one batch element
# per grid step.  Tiles are (Tt, H): phonemes on sublanes, channels on lanes.
# ----------------------------------------------------------------------------
def _text_dur_kernel(h_ref, mask_ref, tw_ref, tb_ref, dw_ref, db_ref,
                     x_ref, dur_ref):
    mask = mask_ref[0]                                         # (Tt, 1)
    # text-encoder linear: bf16 MXU operands, f32 accumulate
    x = jnp.dot(h_ref[0].astype(jnp.bfloat16), tw_ref[...],
                preferred_element_type=jnp.float32) + tb_ref[...]
    x = jnp.maximum(x, 0.0) * mask                             # (Tt, H)
    # duration predictor (tiny matvec, f32) + ceil(exp(.) * mask)
    logw = jnp.dot(x, dw_ref[...],
                   preferred_element_type=jnp.float32) + db_ref[...]
    dur_ref[0] = jnp.ceil(jnp.exp(logw) * mask)                # (Tt, 1)
    x_ref[0] = x


def text_duration_pallas(h, x_mask_col, te_wt, te_b, dur_wt, dur_b):
    B, Tt, H = h.shape
    bspec = lambda r, c: pl.BlockSpec((1, r, c), lambda i: (i, 0, 0))
    wspec = lambda r, c: pl.BlockSpec((r, c), lambda i: (0, 0))
    return pl.pallas_call(
        _text_dur_kernel,
        out_shape=(jax.ShapeDtypeStruct((B, Tt, H), jnp.float32),
                   jax.ShapeDtypeStruct((B, Tt, 1), jnp.float32)),
        grid=(B,),
        in_specs=[bspec(Tt, H), bspec(Tt, 1), wspec(H, H), wspec(1, H),
                  wspec(H, 1), wspec(1, 1)],
        out_specs=(bspec(Tt, H), bspec(Tt, 1)),
        compiler_params=pltpu.CompilerParams(dimension_semantics=("parallel",)),
    )(h, x_mask_col, te_wt, te_b, dur_wt, dur_b)


# ----------------------------------------------------------------------------
# Kernel 2: fused frame-domain chain (expand -> frame prior -> pitch ->
# prior sample + inverse flow -> vocoder), one batch element per grid step.
# All intermediates stay in VMEM/vregs; only o / cf0 / vuv / f0 are written.
# ----------------------------------------------------------------------------
def _frame_chain_kernel(x_ref, pat_ref, ymask_ref, eps_ref,
                        w1_ref, w2m_ref, w2s_ref, pw_ref, pb_ref,
                        rowp_ref, vz_ref, vocp_ref,
                        o_ref, cf0_ref, vuv_ref, f0_ref):
    f32, bf16 = jnp.float32, jnp.bfloat16
    mask = ymask_ref[0]                                        # (Tf, 1)

    # phoneme -> frame expansion: (Tf, Tt) @ (Tt, H), no transpose materialized.
    xf = jnp.dot(pat_ref[0], x_ref[0].astype(bf16), preferred_element_type=f32)

    # frame prior network layer 1 (+ReLU, mask) — bf16 MXU, f32 accumulate
    h1 = jnp.dot(xf.astype(bf16), w1_ref[...], preferred_element_type=f32)
    h1 = jnp.maximum(h1 + rowp_ref[0:1, :], 0.0) * mask        # (Tf, C)
    h1b = h1.astype(bf16)

    # frame prior network layer 2 -> m_p, logs_p (weights pre-split outside)
    m_p = (jnp.dot(h1b, w2m_ref[...], preferred_element_type=f32)
           + rowp_ref[1:2, :]) * mask
    logs_p = (jnp.dot(h1b, w2s_ref[...], preferred_element_type=f32)
              + rowp_ref[2:3, :]) * mask

    # pitch predictor + fused post-processing (sigmoid(v) > 0.5  <=>  v > 0)
    pitch = jnp.dot(h1, pw_ref[...], preferred_element_type=f32) + pb_ref[...]
    cf0 = jnp.exp(pitch[:, 0:1])                               # (Tf, 1)
    vuv = jnp.where(pitch[:, 1:2] > 0.0, 1.0, 0.0)
    f0 = cf0 * vuv
    cf0_ref[0] = cf0
    vuv_ref[0] = vuv
    f0_ref[0] = f0

    # prior sampling + inverse affine flow (eps pre-scaled by noise_scale,
    # exp(-logscale) precomputed into rowp[4]).
    z_p = (m_p + eps_ref[0] * jnp.exp(logs_p)) * mask
    z = (z_p - rowp_ref[3:4, :]) * rowp_ref[4:5, :] * mask     # (Tf, C)

    # vocoder projection; frames-as-rows so the row-major reshape outside IS
    # the interleaved upsample: o[b, 0, t*U + u] = y[t, u].
    y = jnp.dot(z.astype(bf16), vz_ref[...], preferred_element_type=f32)
    o_ref[0] = jnp.tanh(y + f0 * vocp_ref[0:1, :] + vocp_ref[1:2, :])


def frame_chain_pallas(x_feat, p_attn_bf16, y_mask_col, eps_scaled,
                       w1t, w2mt, w2st, pwt, pb, rowp, vzt, vocp):
    B, Tt, H = x_feat.shape
    Tf = p_attn_bf16.shape[1]
    C = w1t.shape[1]
    U = vzt.shape[1]
    bspec = lambda r, c: pl.BlockSpec((1, r, c), lambda i: (i, 0, 0))
    wspec = lambda r, c: pl.BlockSpec((r, c), lambda i: (0, 0))
    return pl.pallas_call(
        _frame_chain_kernel,
        out_shape=(jax.ShapeDtypeStruct((B, Tf, U), jnp.float32),
                   jax.ShapeDtypeStruct((B, Tf, 1), jnp.float32),
                   jax.ShapeDtypeStruct((B, Tf, 1), jnp.float32),
                   jax.ShapeDtypeStruct((B, Tf, 1), jnp.float32)),
        grid=(B,),
        in_specs=[bspec(Tt, H), bspec(Tf, Tt), bspec(Tf, 1), bspec(Tf, C),
                  wspec(H, C), wspec(C, C), wspec(C, C), wspec(C, 2),
                  wspec(1, 2), wspec(5, C), wspec(C, U), wspec(2, U)],
        out_specs=(bspec(Tf, U), bspec(Tf, 1), bspec(Tf, 1), bspec(Tf, 1)),
        compiler_params=pltpu.CompilerParams(dimension_semantics=("parallel",)),
    )(x_feat, p_attn_bf16, y_mask_col, eps_scaled,
      w1t, w2mt, w2st, pwt, pb, rowp, vzt, vocp)


# ----------------------------------------------------------------------------
# Parameters (deterministic synthetic init — shapes implied by the module)
# ----------------------------------------------------------------------------
def init_params(key, vocab=40, hidden=32, inter_channels=16, upsample=16):
    ks = jax.random.split(key, 12)
    n = lambda k, shape: (0.1 * jax.random.normal(k, shape)).astype(jnp.float32)
    return dict(
        emb=n(ks[0], (vocab, hidden)),
        te_w=n(ks[1], (hidden, hidden)), te_b=n(ks[2], (hidden,)),
        dur_w=n(ks[3], (1, hidden)), dur_b=n(ks[4], (1,)),
        fpn_w1=n(ks[5], (inter_channels, hidden)), fpn_b1=n(ks[6], (inter_channels,)),
        fpn_w2=n(ks[7], (2 * inter_channels, inter_channels)),
        fpn_b2=n(ks[8], (2 * inter_channels,)),
        pitch_w=n(ks[9], (2, inter_channels)), pitch_b=n(ks[10], (2,)),
        flow_shift=n(ks[11], (inter_channels,)),
        flow_logscale=jnp.zeros((inter_channels,), jnp.float32),
        voc_wz=n(jax.random.fold_in(key, 101), (upsample, inter_channels)),
        voc_wf=n(jax.random.fold_in(key, 102), (upsample,)),
        voc_b=n(jax.random.fold_in(key, 103), (upsample,)),
    )


# ----------------------------------------------------------------------------
# XVITS.forward  (inference path; cond/context are None as in the reference
# when style_diffusion / context_embedder are absent)
# ----------------------------------------------------------------------------
def xvits_forward(params, tokens, x_lengths, key, noise_scale=0.667, t_frame_max=32):
    f32, bf16 = jnp.float32, jnp.bfloat16
    B, Tt = tokens.shape
    H = params["te_w"].shape[0]
    C = params["fpn_w1"].shape[0]
    U = params["voc_wz"].shape[0]
    Tf = t_frame_max

    x_mask = (jnp.arange(Tt)[None, :] < x_lengths[:, None]).astype(f32)     # (B, Tt)

    # --- text encoder front-end: embedding lookup (gather stays in JAX) ---
    h = jnp.take(params["emb"], tokens, axis=0)                             # (B, Tt, H)

    # weights packed once: pre-transposed, lane-major biases, bf16 MXU operands
    te_wt = params["te_w"].T.astype(bf16)                                   # (H, H)
    te_b = params["te_b"].reshape(1, H)
    dur_wt = params["dur_w"].T                                              # (H, 1) f32
    dur_b = params["dur_b"].reshape(1, 1)

    # --- kernel 1: text-encoder linear + duration predictor ---
    x_feat, dur_col = text_duration_pallas(h, x_mask[:, :, None],
                                           te_wt, te_b, dur_wt, dur_b)
    duration = dur_col[:, :, 0]                                             # (B, Tt)

    # --- duration handler bookkeeping (monotonic path; integer logic in JAX) ---
    y_lengths = jnp.clip(jnp.sum(duration, axis=-1), 1, Tf)
    y_mask = (jnp.arange(Tf)[None, :] < y_lengths[:, None]).astype(f32)     # (B, Tf)
    cum = jnp.cumsum(duration, axis=-1)                                     # (B, Tt)
    path = (jnp.arange(Tf)[None, None, :] < cum[:, :, None]).astype(f32)    # (B, Tt, Tf)
    path = path - jnp.pad(path, ((0, 0), (1, 0), (0, 0)))[:, :-1, :]
    p_attn = jnp.transpose(path, (0, 2, 1))                                 # (B, Tf, Tt)
    p_attn = p_attn * y_mask[:, :, None] * x_mask[:, None, :]

    # --- pack frame-chain params (once per forward; all tiny) ---
    w1t = params["fpn_w1"].T.astype(bf16)                                   # (H, C)
    w2t = params["fpn_w2"].T                                                # (C, 2C)
    w2mt = w2t[:, :C].astype(bf16)
    w2st = w2t[:, C:].astype(bf16)
    pwt = params["pitch_w"].T                                               # (C, 2) f32
    pb = params["pitch_b"].reshape(1, 2)
    rowp = jnp.stack([params["fpn_b1"], params["fpn_b2"][:C],
                      params["fpn_b2"][C:], params["flow_shift"],
                      jnp.exp(-params["flow_logscale"])], axis=0)           # (5, C)
    vzt = params["voc_wz"].T.astype(bf16)                                   # (C, U)
    vocp = jnp.stack([params["voc_wf"], params["voc_b"]], axis=0)           # (2, U)

    eps_scaled = noise_scale * jax.random.normal(key, (B, Tf, C), dtype=f32)

    # --- kernel 2: fused frame-domain chain ---
    y_voc, cf0_col, vuv_col, f0_col = frame_chain_pallas(
        x_feat, p_attn.astype(bf16), y_mask[:, :, None], eps_scaled,
        w1t, w2mt, w2st, pwt, pb, rowp, vzt, vocp)

    # row-major (B, Tf, U) -> (B, 1, Tf*U) IS the interleaved upsample (free reshape)
    o = y_voc.reshape(B, 1, Tf * U)
    cf0 = jnp.transpose(cf0_col, (0, 2, 1))                                 # (B, 1, Tf)
    vuv = jnp.transpose(vuv_col, (0, 2, 1))
    f0 = jnp.transpose(f0_col, (0, 2, 1))
    duration_out = jnp.transpose(dur_col, (0, 2, 1))                        # (B, 1, Tt)
    return o, (p_attn, f0, cf0, vuv, duration_out)


# ----------------------------------------------------------------------------
if __name__ == "__main__":
    key = jax.random.PRNGKey(0)
    pk, tk, nk = jax.random.split(key, 3)

    B, Tt, vocab = 2, 8, 40
    params = init_params(pk, vocab=vocab, hidden=32, inter_channels=16, upsample=16)

    tokens = jax.random.randint(tk, (B, Tt), 0, vocab)
    x_lengths = jnp.array([8, 6], dtype=jnp.int32)

    fwd = jax.jit(xvits_forward, static_argnames=("t_frame_max",))
    o, (p_attn, f0, cf0, vuv, duration) = fwd(params, tokens, x_lengths, nk,
                                              noise_scale=0.667, t_frame_max=32)
    jax.block_until_ready((o, p_attn, f0, cf0, vuv, duration))

    assert o.shape == (B, 1, 32 * 16)
    assert p_attn.shape == (B, 32, Tt)
    assert f0.shape == (B, 1, 32) and cf0.shape == (B, 1, 32) and vuv.shape == (B, 1, 32)
    assert duration.shape == (B, 1, Tt)
    print("KERNEL_OK")
</pallas_src>

<mosaic_0001>
module attributes {stable_mosaic.version = 11 : i64} {
  func.func @_frame_chain_kernel(%arg0: i32, %arg1: memref<1x8x32xf32, #tpu.memory_space<vmem>>, %arg2: memref<1x32x8xbf16, #tpu.memory_space<vmem>>, %arg3: memref<1x32x1xf32, #tpu.memory_space<vmem>>, %arg4: memref<1x32x16xf32, #tpu.memory_space<vmem>>, %arg5: memref<32x16xbf16, #tpu.memory_space<vmem>>, %arg6: memref<16x16xbf16, #tpu.memory_space<vmem>>, %arg7: memref<16x16xbf16, #tpu.memory_space<vmem>>, %arg8: memref<16x2xf32, #tpu.memory_space<vmem>>, %arg9: memref<1x2xf32, #tpu.memory_space<vmem>>, %arg10: memref<5x16xf32, #tpu.memory_space<vmem>>, %arg11: memref<16x16xbf16, #tpu.memory_space<vmem>>, %arg12: memref<2x16xf32, #tpu.memory_space<vmem>>, %arg13: memref<1x32x16xf32, #tpu.memory_space<vmem>>, %arg14: memref<1x32x1xf32, #tpu.memory_space<vmem>>, %arg15: memref<1x32x1xf32, #tpu.memory_space<vmem>>, %arg16: memref<1x32x1xf32, #tpu.memory_space<vmem>>) attributes {dimension_semantics = [#tpu.dimension_semantics<parallel>], iteration_bounds = array<i64: 2>, scalar_prefetch = 0 : i64, scratch_operands = 0 : i64, tpu.core_type = #tpu.core_type<tc>, window_params = [{transform_indices = @transform_0, window_bounds = array<i64: 1, 8, 32>}, {transform_indices = @transform_1, window_bounds = array<i64: 1, 32, 8>}, {transform_indices = @transform_2, window_bounds = array<i64: 1, 32, 1>}, {transform_indices = @transform_3, window_bounds = array<i64: 1, 32, 16>}, {pipeline_mode = #tpu.pipeline_mode<synchronous>, transform_indices = @transform_4, window_bounds = array<i64: 32, 16>}, {pipeline_mode = #tpu.pipeline_mode<synchronous>, transform_indices = @transform_5, window_bounds = array<i64: 16, 16>}, {pipeline_mode = #tpu.pipeline_mode<synchronous>, transform_indices = @transform_6, window_bounds = array<i64: 16, 16>}, {pipeline_mode = #tpu.pipeline_mode<synchronous>, transform_indices = @transform_7, window_bounds = array<i64: 16, 2>}, {pipeline_mode = #tpu.pipeline_mode<synchronous>, transform_indices = @transform_8, window_bounds = array<i64: 1, 2>}, {pipeline_mode = #tpu.pipeline_mode<synchronous>, transform_indices = @transform_9, window_bounds = array<i64: 5, 16>}, {pipeline_mode = #tpu.pipeline_mode<synchronous>, transform_indices = @transform_10, window_bounds = array<i64: 16, 16>}, {pipeline_mode = #tpu.pipeline_mode<synchronous>, transform_indices = @transform_11, window_bounds = array<i64: 2, 16>}, {transform_indices = @transform_12, window_bounds = array<i64: 1, 32, 16>}, {transform_indices = @transform_13, window_bounds = array<i64: 1, 32, 1>}, {transform_indices = @transform_14, window_bounds = array<i64: 1, 32, 1>}, {transform_indices = @transform_15, window_bounds = array<i64: 1, 32, 1>}]} {
    %c0 = arith.constant 0 : index
    %c0_0 = arith.constant 0 : index
    %c0_1 = arith.constant 0 : index
    %0 = vector.load %arg3[%c0, %c0_0, %c0_1] : memref<1x32x1xf32, #tpu.memory_space<vmem>>, vector<1x32x1xf32>
    %1 = vector.shape_cast %0 : vector<1x32x1xf32> to vector<32x1xf32>
    %c0_2 = arith.constant 0 : index
    %c0_3 = arith.constant 0 : index
    %c0_4 = arith.constant 0 : index
    %2 = vector.load %arg2[%c0_2, %c0_3, %c0_4] : memref<1x32x8xbf16, #tpu.memory_space<vmem>>, vector<1x32x8xbf16>
    %3 = vector.shape_cast %2 : vector<1x32x8xbf16> to vector<32x8xbf16>
    %c0_5 = arith.constant 0 : index
    %c0_6 = arith.constant 0 : index
    %c0_7 = arith.constant 0 : index
    %4 = vector.load %arg1[%c0_5, %c0_6, %c0_7] : memref<1x8x32xf32, #tpu.memory_space<vmem>>, vector<1x8x32xf32>
    %5 = vector.shape_cast %4 : vector<1x8x32xf32> to vector<8x32xf32>
    %6 = arith.truncf %5 : vector<8x32xf32> to vector<8x32xbf16>
    %cst = arith.constant dense<0.000000e+00> : vector<32x32xf32>
    %7 = tpu.matmul %3, %6, %cst {dimension_numbers = #tpu.dot_dimension_numbers<[1], [0], [0], [1], [0, 0, 1, 1], [], []>} : vector<32x8xbf16>, vector<8x32xbf16>, vector<32x32xf32> -> vector<32x32xf32>
    %8 = arith.truncf %7 : vector<32x32xf32> to vector<32x32xbf16>
    %c0_8 = arith.constant 0 : index
    %c0_9 = arith.constant 0 : index
    %9 = vector.load %arg5[%c0_8, %c0_9] : memref<32x16xbf16, #tpu.memory_space<vmem>>, vector<32x16xbf16>
    %cst_10 = arith.constant dense<0.000000e+00> : vector<32x16xf32>
    %10 = tpu.matmul %8, %9, %cst_10 {dimension_numbers = #tpu.dot_dimension_numbers<[1], [0], [0], [1], [0, 0, 1, 1], [], []>} : vector<32x32xbf16>, vector<32x16xbf16>, vector<32x16xf32> -> vector<32x16xf32>
    %c0_11 = arith.constant 0 : index
    %c0_12 = arith.constant 0 : index
    %11 = vector.load %arg10[%c0_11, %c0_12] : memref<5x16xf32, #tpu.memory_space<vmem>>, vector<1x16xf32>
    %12 = vector.broadcast %11 : vector<1x16xf32> to vector<32x16xf32>
    %13 = arith.addf %10, %12 : vector<32x16xf32>
    %cst_13 = arith.constant 0.000000e+00 : f32
    %14 = vector.broadcast %cst_13 : f32 to vector<32x16xf32>
    %15 = arith.maximumf %13, %14 : vector<32x16xf32>
    %16 = vector.broadcast %1 : vector<32x1xf32> to vector<32x16xf32>
    %17 = arith.mulf %15, %16 : vector<32x16xf32>
    %18 = arith.truncf %17 : vector<32x16xf32> to vector<32x16xbf16>
    %c0_14 = arith.constant 0 : index
    %c0_15 = arith.constant 0 : index
    %19 = vector.load %arg6[%c0_14, %c0_15] : memref<16x16xbf16, #tpu.memory_space<vmem>>, vector<16x16xbf16>
    %cst_16 = arith.constant dense<0.000000e+00> : vector<32x16xf32>
    %20 = tpu.matmul %18, %19, %cst_16 {dimension_numbers = #tpu.dot_dimension_numbers<[1], [0], [0], [1], [0, 0, 1, 1], [], []>} : vector<32x16xbf16>, vector<16x16xbf16>, vector<32x16xf32> -> vector<32x16xf32>
    %c1 = arith.constant 1 : index
    %c0_17 = arith.constant 0 : index
    %21 = vector.load %arg10[%c1, %c0_17] : memref<5x16xf32, #tpu.memory_space<vmem>>, vector<1x16xf32>
    %22 = vector.broadcast %21 : vector<1x16xf32> to vector<32x16xf32>
    %23 = arith.addf %20, %22 : vector<32x16xf32>
    %24 = vector.broadcast %1 : vector<32x1xf32> to vector<32x16xf32>
    %25 = arith.mulf %23, %24 : vector<32x16xf32>
    %c0_18 = arith.constant 0 : index
    %c0_19 = arith.constant 0 : index
    %26 = vector.load %arg7[%c0_18, %c0_19] : memref<16x16xbf16, #tpu.memory_space<vmem>>, vector<16x16xbf16>
    %cst_20 = arith.constant dense<0.000000e+00> : vector<32x16xf32>
    %27 = tpu.matmul %18, %26, %cst_20 {dimension_numbers = #tpu.dot_dimension_numbers<[1], [0], [0], [1], [0, 0, 1, 1], [], []>} : vector<32x16xbf16>, vector<16x16xbf16>, vector<32x16xf32> -> vector<32x16xf32>
    %c2 = arith.constant 2 : index
    %c0_21 = arith.constant 0 : index
    %28 = vector.load %arg10[%c2, %c0_21] : memref<5x16xf32, #tpu.memory_space<vmem>>, vector<1x16xf32>
    %29 = vector.broadcast %28 : vector<1x16xf32> to vector<32x16xf32>
    %30 = arith.addf %27, %29 : vector<32x16xf32>
    %31 = vector.broadcast %1 : vector<32x1xf32> to vector<32x16xf32>
    %32 = arith.mulf %30, %31 : vector<32x16xf32>
    %c0_22 = arith.constant 0 : index
    %c0_23 = arith.constant 0 : index
    %33 = vector.load %arg8[%c0_22, %c0_23] : memref<16x2xf32, #tpu.memory_space<vmem>>, vector<16x2xf32>
    %cst_24 = arith.constant dense<0.000000e+00> : vector<32x2xf32>
    %34 = tpu.matmul %17, %33, %cst_24 {dimension_numbers = #tpu.dot_dimension_numbers<[1], [0], [0], [1], [0, 0, 1, 1], [], []>} : vector<32x16xf32>, vector<16x2xf32>, vector<32x2xf32> -> vector<32x2xf32>
    %c0_25 = arith.constant 0 : index
    %c0_26 = arith.constant 0 : index
    %35 = vector.load %arg9[%c0_25, %c0_26] : memref<1x2xf32, #tpu.memory_space<vmem>>, vector<1x2xf32>
    %36 = vector.broadcast %35 : vector<1x2xf32> to vector<32x2xf32>
    %37 = arith.addf %34, %36 : vector<32x2xf32>
    %38 = vector.extract_strided_slice %37 {offsets = [0, 0], sizes = [32, 1], strides = [1, 1]} : vector<32x2xf32> to vector<32x1xf32>
    %39 = math.exp %38 : vector<32x1xf32>
    %40 = vector.extract_strided_slice %37 {offsets = [0, 1], sizes = [32, 1], strides = [1, 1]} : vector<32x2xf32> to vector<32x1xf32>
    %cst_27 = arith.constant 0.000000e+00 : f32
    %41 = vector.broadcast %cst_27 : f32 to vector<32x1xf32>
    %42 = arith.cmpf ogt, %40, %41 : vector<32x1xf32>
    %cst_28 = arith.constant 1.000000e+00 : f32
    %cst_29 = arith.constant 0.000000e+00 : f32
    %43 = vector.broadcast %cst_28 : f32 to vector<32x1xf32>
    %44 = vector.broadcast %cst_29 : f32 to vector<32x1xf32>
    %45 = arith.select %42, %43, %44 : vector<32x1xi1>, vector<32x1xf32>
    %46 = arith.mulf %39, %45 : vector<32x1xf32>
    %c0_30 = arith.constant 0 : index
    %c0_31 = arith.constant 0 : index
    %c0_32 = arith.constant 0 : index
    %47 = vector.load %arg14[%c0_30, %c0_31, %c0_32] : memref<1x32x1xf32, #tpu.memory_space<vmem>>, vector<1x32x1xf32>
    %48 = vector.shape_cast %47 : vector<1x32x1xf32> to vector<32x1xf32>
    %49 = vector.shape_cast %39 : vector<32x1xf32> to vector<1x32x1xf32>
    tpu.vector_store %arg14[%c0_30, %c0_31, %c0_32], %49 {strides = array<i32>} : memref<1x32x1xf32, #tpu.memory_space<vmem>>, vector<1x32x1xf32>,
    %c0_33 = arith.constant 0 : index
    %c0_34 = arith.constant 0 : index
    %c0_35 = arith.constant 0 : index
    %50 = vector.load %arg15[%c0_33, %c0_34, %c0_35] : memref<1x32x1xf32, #tpu.memory_space<vmem>>, vector<1x32x1xf32>
    %51 = vector.shape_cast %50 : vector<1x32x1xf32> to vector<32x1xf32>
    %52 = vector.shape_cast %45 : vector<32x1xf32> to vector<1x32x1xf32>
    tpu.vector_store %arg15[%c0_33, %c0_34, %c0_35], %52 {strides = array<i32>} : memref<1x32x1xf32, #tpu.memory_space<vmem>>, vector<1x32x1xf32>,
    %c0_36 = arith.constant 0 : index
    %c0_37 = arith.constant 0 : index
    %c0_38 = arith.constant 0 : index
    %53 = vector.load %arg16[%c0_36, %c0_37, %c0_38] : memref<1x32x1xf32, #tpu.memory_space<vmem>>, vector<1x32x1xf32>
    %54 = vector.shape_cast %53 : vector<1x32x1xf32> to vector<32x1xf32>
    %55 = vector.shape_cast %46 : vector<32x1xf32> to vector<1x32x1xf32>
    tpu.vector_store %arg16[%c0_36, %c0_37, %c0_38], %55 {strides = array<i32>} : memref<1x32x1xf32, #tpu.memory_space<vmem>>, vector<1x32x1xf32>,
    %c0_39 = arith.constant 0 : index
    %c0_40 = arith.constant 0 : index
    %c0_41 = arith.constant 0 : index
    %56 = vector.load %arg4[%c0_39, %c0_40, %c0_41] : memref<1x32x16xf32, #tpu.memory_space<vmem>>, vector<1x32x16xf32>
    %57 = vector.shape_cast %56 : vector<1x32x16xf32> to vector<32x16xf32>
    %58 = math.exp %32 : vector<32x16xf32>
    %59 = arith.mulf %57, %58 : vector<32x16xf32>
    %60 = arith.addf %25, %59 : vector<32x16xf32>
    %61 = vector.broadcast %1 : vector<32x1xf32> to vector<32x16xf32>
    %62 = arith.mulf %60, %61 : vector<32x16xf32>
    %c3 = arith.constant 3 : index
    %c0_42 = arith.constant 0 : index
    %63 = vector.load %arg10[%c3, %c0_42] : memref<5x16xf32, #tpu.memory_space<vmem>>, vector<1x16xf32>
    %64 = vector.broadcast %63 : vector<1x16xf32> to vector<32x16xf32>
    %65 = arith.subf %62, %64 : vector<32x16xf32>
    %c4 = arith.constant 4 : index
    %c0_43 = arith.constant 0 : index
    %66 = vector.load %arg10[%c4, %c0_43] : memref<5x16xf32, #tpu.memory_space<vmem>>, vector<1x16xf32>
    %67 = vector.broadcast %66 : vector<1x16xf32> to vector<32x16xf32>
    %68 = arith.mulf %65, %67 : vector<32x16xf32>
    %69 = vector.broadcast %1 : vector<32x1xf32> to vector<32x16xf32>
    %70 = arith.mulf %68, %69 : vector<32x16xf32>
    %71 = arith.truncf %70 : vector<32x16xf32> to vector<32x16xbf16>
    %c0_44 = arith.constant 0 : index
    %c0_45 = arith.constant 0 : index
    %72 = vector.load %arg11[%c0_44, %c0_45] : memref<16x16xbf16, #tpu.memory_space<vmem>>, vector<16x16xbf16>
    %cst_46 = arith.constant dense<0.000000e+00> : vector<32x16xf32>
    %73 = tpu.matmul %71, %72, %cst_46 {dimension_numbers = #tpu.dot_dimension_numbers<[1], [0], [0], [1], [0, 0, 1, 1], [], []>} : vector<32x16xbf16>, vector<16x16xbf16>, vector<32x16xf32> -> vector<32x16xf32>
    %c0_47 = arith.constant 0 : index
    %c0_48 = arith.constant 0 : index
    %74 = vector.load %arg12[%c0_47, %c0_48] : memref<2x16xf32, #tpu.memory_space<vmem>>, vector<1x16xf32>
    %75 = vector.broadcast %46 : vector<32x1xf32> to vector<32x16xf32>
    %76 = vector.broadcast %74 : vector<1x16xf32> to vector<32x16xf32>
    %77 = arith.mulf %75, %76 : vector<32x16xf32>
    %78 = arith.addf %73, %77 : vector<32x16xf32>
    %c1_49 = arith.constant 1 : index
    %c0_50 = arith.constant 0 : index
    %79 = vector.load %arg12[%c1_49, %c0_50] : memref<2x16xf32, #tpu.memory_space<vmem>>, vector<1x16xf32>
    %80 = vector.broadcast %79 : vector<1x16xf32> to vector<32x16xf32>
    %81 = arith.addf %78, %80 : vector<32x16xf32>
    %82 = math.tanh %81 : vector<32x16xf32>
    %c0_51 = arith.constant 0 : index
    %c0_52 = arith.constant 0 : index
    %c0_53 = arith.constant 0 : index
    %83 = vector.load %arg13[%c0_51, %c0_52, %c0_53] : memref<1x32x16xf32, #tpu.memory_space<vmem>>, vector<1x32x16xf32>
    %84 = vector.shape_cast %83 : vector<1x32x16xf32> to vector<32x16xf32>
    %85 = vector.shape_cast %82 : vector<32x16xf32> to vector<1x32x16xf32>
    tpu.vector_store %arg13[%c0_51, %c0_52, %c0_53], %85 {strides = array<i32>} : memref<1x32x16xf32, #tpu.memory_space<vmem>>, vector<1x32x16xf32>,
    return
  }
  func.func @transform_0(%arg0: i32) -> (i32, i32, i32) {
    %c0_i32 = arith.constant 0 : i32
    %c0_i32_0 = arith.constant 0 : i32
    %c0_i32_1 = arith.constant 0 : i32
    return %arg0, %c0_i32, %c0_i32_0 : i32, i32, i32
  }
  func.func @transform_1(%arg0: i32) -> (i32, i32, i32) {
    %c0_i32 = arith.constant 0 : i32
    %c0_i32_0 = arith.constant 0 : i32
    %c0_i32_1 = arith.constant 0 : i32
    return %arg0, %c0_i32, %c0_i32_0 : i32, i32, i32
  }
  func.func @transform_2(%arg0: i32) -> (i32, i32, i32) {
    %c0_i32 = arith.constant 0 : i32
    %c0_i32_0 = arith.constant 0 : i32
    %c0_i32_1 = arith.constant 0 : i32
    return %arg0, %c0_i32, %c0_i32_0 : i32, i32, i32
  }
  func.func @transform_3(%arg0: i32) -> (i32, i32, i32) {
    %c0_i32 = arith.constant 0 : i32
    %c0_i32_0 = arith.constant 0 : i32
    %c0_i32_1 = arith.constant 0 : i32
    return %arg0, %c0_i32, %c0_i32_0 : i32, i32, i32
  }
  func.func @transform_4(%arg0: i32) -> (i32, i32) {
    %c0_i32 = arith.constant 0 : i32
    %c0_i32_0 = arith.constant 0 : i32
    %c0_i32_1 = arith.constant 0 : i32
    return %c0_i32, %c0_i32_0 : i32, i32
  }
  func.func @transform_5(%arg0: i32) -> (i32, i32) {
    %c0_i32 = arith.constant 0 : i32
    %c0_i32_0 = arith.constant 0 : i32
    %c0_i32_1 = arith.constant 0 : i32
    return %c0_i32, %c0_i32_0 : i32, i32
  }
  func.func @transform_6(%arg0: i32) -> (i32, i32) {
    %c0_i32 = arith.constant 0 : i32
    %c0_i32_0 = arith.constant 0 : i32
    %c0_i32_1 = arith.constant 0 : i32
    return %c0_i32, %c0_i32_0 : i32, i32
  }
  func.func @transform_7(%arg0: i32) -> (i32, i32) {
    %c0_i32 = arith.constant 0 : i32
    %c0_i32_0 = arith.constant 0 : i32
    %c0_i32_1 = arith.constant 0 : i32
    return %c0_i32, %c0_i32_0 : i32, i32
  }
  func.func @transform_8(%arg0: i32) -> (i32, i32) {
    %c0_i32 = arith.constant 0 : i32
    %c0_i32_0 = arith.constant 0 : i32
    %c0_i32_1 = arith.constant 0 : i32
    return %c0_i32, %c0_i32_0 : i32, i32
  }
  func.func @transform_9(%arg0: i32) -> (i32, i32) {
    %c0_i32 = arith.constant 0 : i32
    %c0_i32_0 = arith.constant 0 : i32
    %c0_i32_1 = arith.constant 0 : i32
    return %c0_i32, %c0_i32_0 : i32, i32
  }
  func.func @transform_10(%arg0: i32) -> (i32, i32) {
    %c0_i32 = arith.constant 0 : i32
    %c0_i32_0 = arith.constant 0 : i32
    %c0_i32_1 = arith.constant 0 : i32
    return %c0_i32, %c0_i32_0 : i32, i32
  }
  func.func @transform_11(%arg0: i32) -> (i32, i32) {
    %c0_i32 = arith.constant 0 : i32
    %c0_i32_0 = arith.constant 0 : i32
    %c0_i32_1 = arith.constant 0 : i32
    return %c0_i32, %c0_i32_0 : i32, i32
  }
  func.func @transform_12(%arg0: i32) -> (i32, i32, i32) {
    %c0_i32 = arith.constant 0 : i32
    %c0_i32_0 = arith.constant 0 : i32
    %c0_i32_1 = arith.constant 0 : i32
    return %arg0, %c0_i32, %c0_i32_0 : i32, i32, i32
  }
  func.func @transform_13(%arg0: i32) -> (i32, i32, i32) {
    %c0_i32 = arith.constant 0 : i32
    %c0_i32_0 = arith.constant 0 : i32
    %c0_i32_1 = arith.constant 0 : i32
    return %arg0, %c0_i32, %c0_i32_0 : i32, i32, i32
  }
  func.func @transform_14(%arg0: i32) -> (i32, i32, i32) {
    %c0_i32 = arith.constant 0 : i32
    %c0_i32_0 = arith.constant 0 : i32
    %c0_i32_1 = arith.constant 0 : i32
    return %arg0, %c0_i32, %c0_i32_0 : i32, i32, i32
  }
  func.func @transform_15(%arg0: i32) -> (i32, i32, i32) {
    %c0_i32 = arith.constant 0 : i32
    %c0_i32_0 = arith.constant 0 : i32
    %c0_i32_1 = arith.constant 0 : i32
    return %arg0, %c0_i32, %c0_i32_0 : i32, i32, i32
  }
}

module attributes {stable_mosaic.version = 11 : i64} {
  func.func @_text_dur_kernel(%arg0: i32, %arg1: memref<1x8x32xf32, #tpu.memory_space<vmem>>, %arg2: memref<1x8x1xf32, #tpu.memory_space<vmem>>, %arg3: memref<32x32xbf16, #tpu.memory_space<vmem>>, %arg4: memref<1x32xf32, #tpu.memory_space<vmem>>, %arg5: memref<32x1xf32, #tpu.memory_space<vmem>>, %arg6: memref<1x1xf32, #tpu.memory_space<vmem>>, %arg7: memref<1x8x32xf32, #tpu.memory_space<vmem>>, %arg8: memref<1x8x1xf32, #tpu.memory_space<vmem>>) attributes {dimension_semantics = [#tpu.dimension_semantics<parallel>], iteration_bounds = array<i64: 2>, scalar_prefetch = 0 : i64, scratch_operands = 0 : i64, tpu.core_type = #tpu.core_type<tc>, window_params = [{transform_indices = @transform_0, window_bounds = array<i64: 1, 8, 32>}, {transform_indices = @transform_1, window_bounds = array<i64: 1, 8, 1>}, {pipeline_mode = #tpu.pipeline_mode<synchronous>, transform_indices = @transform_2, window_bounds = array<i64: 32, 32>}, {pipeline_mode = #tpu.pipeline_mode<synchronous>, transform_indices = @transform_3, window_bounds = array<i64: 1, 32>}, {pipeline_mode = #tpu.pipeline_mode<synchronous>, transform_indices = @transform_4, window_bounds = array<i64: 32, 1>}, {pipeline_mode = #tpu.pipeline_mode<synchronous>, transform_indices = @transform_5, window_bounds = array<i64: 1, 1>}, {transform_indices = @transform_6, window_bounds = array<i64: 1, 8, 32>}, {transform_indices = @transform_7, window_bounds = array<i64: 1, 8, 1>}]} {
    %c0 = arith.constant 0 : index
    %c0_0 = arith.constant 0 : index
    %c0_1 = arith.constant 0 : index
    %0 = vector.load %arg2[%c0, %c0_0, %c0_1] : memref<1x8x1xf32, #tpu.memory_space<vmem>>, vector<1x8x1xf32>
    %1 = vector.shape_cast %0 : vector<1x8x1xf32> to vector<8x1xf32>
    %c0_2 = arith.constant 0 : index
    %c0_3 = arith.constant 0 : index
    %c0_4 = arith.constant 0 : index
    %2 = vector.load %arg1[%c0_2, %c0_3, %c0_4] : memref<1x8x32xf32, #tpu.memory_space<vmem>>, vector<1x8x32xf32>
    %3 = vector.shape_cast %2 : vector<1x8x32xf32> to vector<8x32xf32>
    %4 = arith.truncf %3 : vector<8x32xf32> to vector<8x32xbf16>
    %c0_5 = arith.constant 0 : index
    %c0_6 = arith.constant 0 : index
    %5 = vector.load %arg3[%c0_5, %c0_6] : memref<32x32xbf16, #tpu.memory_space<vmem>>, vector<32x32xbf16>
    %cst = arith.constant dense<0.000000e+00> : vector<8x32xf32>
    %6 = tpu.matmul %4, %5, %cst {dimension_numbers = #tpu.dot_dimension_numbers<[1], [0], [0], [1], [0, 0, 1, 1], [], []>} : vector<8x32xbf16>, vector<32x32xbf16>, vector<8x32xf32> -> vector<8x32xf32>
    %c0_7 = arith.constant 0 : index
    %c0_8 = arith.constant 0 : index
    %7 = vector.load %arg4[%c0_7, %c0_8] : memref<1x32xf32, #tpu.memory_space<vmem>>, vector<1x32xf32>
    %8 = vector.broadcast %7 : vector<1x32xf32> to vector<8x32xf32>
    %9 = arith.addf %6, %8 : vector<8x32xf32>
    %cst_9 = arith.constant 0.000000e+00 : f32
    %10 = vector.broadcast %cst_9 : f32 to vector<8x32xf32>
    %11 = arith.maximumf %9, %10 : vector<8x32xf32>
    %12 = vector.broadcast %1 : vector<8x1xf32> to vector<8x32xf32>
    %13 = arith.mulf %11, %12 : vector<8x32xf32>
    %c0_10 = arith.constant 0 : index
    %c0_11 = arith.constant 0 : index
    %14 = vector.load %arg5[%c0_10, %c0_11] : memref<32x1xf32, #tpu.memory_space<vmem>>, vector<32x1xf32>
    %cst_12 = arith.constant dense<0.000000e+00> : vector<8x1xf32>
    %15 = tpu.matmul %13, %14, %cst_12 {dimension_numbers = #tpu.dot_dimension_numbers<[1], [0], [0], [1], [0, 0, 1, 1], [], []>} : vector<8x32xf32>, vector<32x1xf32>, vector<8x1xf32> -> vector<8x1xf32>
    %c0_13 = arith.constant 0 : index
    %c0_14 = arith.constant 0 : index
    %16 = vector.load %arg6[%c0_13, %c0_14] : memref<1x1xf32, #tpu.memory_space<vmem>>, vector<1x1xf32>
    %17 = vector.broadcast %16 : vector<1x1xf32> to vector<8x1xf32>
    %18 = arith.addf %15, %17 : vector<8x1xf32>
    %19 = math.exp %18 : vector<8x1xf32>
    %20 = arith.mulf %19, %1 : vector<8x1xf32>
    %21 = math.ceil %20 : vector<8x1xf32>
    %c0_15 = arith.constant 0 : index
    %c0_16 = arith.constant 0 : index
    %c0_17 = arith.constant 0 : index
    %22 = vector.load %arg8[%c0_15, %c0_16, %c0_17] : memref<1x8x1xf32, #tpu.memory_space<vmem>>, vector<1x8x1xf32>
    %23 = vector.shape_cast %22 : vector<1x8x1xf32> to vector<8x1xf32>
    %24 = vector.shape_cast %21 : vector<8x1xf32> to vector<1x8x1xf32>
    tpu.vector_store %arg8[%c0_15, %c0_16, %c0_17], %24 {strides = array<i32>} : memref<1x8x1xf32, #tpu.memory_space<vmem>>, vector<1x8x1xf32>,
    %c0_18 = arith.constant 0 : index
    %c0_19 = arith.constant 0 : index
    %c0_20 = arith.constant 0 : index
    %25 = vector.load %arg7[%c0_18, %c0_19, %c0_20] : memref<1x8x32xf32, #tpu.memory_space<vmem>>, vector<1x8x32xf32>
    %26 = vector.shape_cast %25 : vector<1x8x32xf32> to vector<8x32xf32>
    %27 = vector.shape_cast %13 : vector<8x32xf32> to vector<1x8x32xf32>
    tpu.vector_store %arg7[%c0_18, %c0_19, %c0_20], %27 {strides = array<i32>} : memref<1x8x32xf32, #tpu.memory_space<vmem>>, vector<1x8x32xf32>,
    return
  }
  func.func @transform_0(%arg0: i32) -> (i32, i32, i32) {
    %c0_i32 = arith.constant 0 : i32
    %c0_i32_0 = arith.constant 0 : i32
    %c0_i32_1 = arith.constant 0 : i32
    return %arg0, %c0_i32, %c0_i32_0 : i32, i32, i32
  }
  func.func @transform_1(%arg0: i32) -> (i32, i32, i32) {
    %c0_i32 = arith.constant 0 : i32
    %c0_i32_0 = arith.constant 0 : i32
    %c0_i32_1 = arith.constant 0 : i32
    return %arg0, %c0_i32, %c0_i32_0 : i32, i32, i32
  }
  func.func @transform_2(%arg0: i32) -> (i32, i32) {
    %c0_i32 = arith.constant 0 : i32
    %c0_i32_0 = arith.constant 0 : i32
    %c0_i32_1 = arith.constant 0 : i32
    return %c0_i32, %c0_i32_0 : i32, i32
  }
  func.func @transform_3(%arg0: i32) -> (i32, i32) {
    %c0_i32 = arith.constant 0 : i32
    %c0_i32_0 = arith.constant 0 : i32
    %c0_i32_1 = arith.constant 0 : i32
    return %c0_i32, %c0_i32_0 : i32, i32
  }
  func.func @transform_4(%arg0: i32) -> (i32, i32) {
    %c0_i32 = arith.constant 0 : i32
    %c0_i32_0 = arith.constant 0 : i32
    %c0_i32_1 = arith.constant 0 : i32
    return %c0_i32, %c0_i32_0 : i32, i32
  }
  func.func @transform_5(%arg0: i32) -> (i32, i32) {
    %c0_i32 = arith.constant 0 : i32
    %c0_i32_0 = arith.constant 0 : i32
    %c0_i32_1 = arith.constant 0 : i32
    return %c0_i32, %c0_i32_0 : i32, i32
  }
  func.func @transform_6(%arg0: i32) -> (i32, i32, i32) {
    %c0_i32 = arith.constant 0 : i32
    %c0_i32_0 = arith.constant 0 : i32
    %c0_i32_1 = arith.constant 0 : i32
    return %arg0, %c0_i32, %c0_i32_0 : i32, i32, i32
  }
  func.func @transform_7(%arg0: i32) -> (i32, i32, i32) {
    %c0_i32 = arith.constant 0 : i32
    %c0_i32_0 = arith.constant 0 : i32
    %c0_i32_1 = arith.constant 0 : i32
    return %arg0, %c0_i32, %c0_i32_0 : i32, i32, i32
  }
}

</mosaic_0001>

<bundles_post_ra>
// kernel: xvits_forward.2
= control target key start
LH: loop header
LB: loop body
LE: loop exit
PB: predicated region body
PF: predicated region fallthrough
CT: control target
= control target key end

     0   :  { %s691_s26 = smov 0   ;;  %s744_s0 = inlined_call_operand.vmem [shape: f32[2,8,32], index: 0, kind: input, shape index: {}]   ;;  %s745_s1 = inlined_call_operand.vmem [shape: f32[2,8,1], index: 1, kind: input, shape index: {}]   ;;  %s746_s2 = inlined_call_operand.vmem [shape: bf16[32,32], index: 2, kind: input, shape index: {}]   ;;  %s747_s3 = inlined_call_operand.vmem [shape: f32[1,32], index: 3, kind: input, shape index: {}]   ;;  %s748_s4 = inlined_call_operand.vmem [shape: f32[32,1], index: 4, kind: input, shape index: {}]   ;;  %s749_s5 = inlined_call_operand.<no memory space> [shape: f32[1,1], index: 5, kind: input, shape index: {}]   ;;  %s750_s6 = inlined_call_operand.vmem [shape: f32[2,8,32], index: 6, kind: output, shape index: {0}]   ;;  %s751_s7 = inlined_call_operand.vmem [shape: f32[2,8,1], index: 7, kind: output, shape index: {1}]  }
   0x1   :  { %v13_v0 = vstv %s749_s5 }
   0x2   :  { %14 = vst [vmem:[#allocation2] sm:$0x1] %v13_v0 }
   0x3 LB: > { %s569_s27 = sadd.s32 4294967295, %s642_s26   ;;  %p573_p0 = scmp.ge.s32.totalorder %s642_s26, 1  ;;  %s642_s26 = sphi %s691_s26, %s20_s26  }
   0x4   : > { %p250_p1 = scmp.lt.s32.totalorder %s642_s26, 3 }
   0x6   : > { %p251_p2 = pnand %p573_p0, %p250_p1 }
   0x7   : > { %v632_v1 = vld [vmem:[%s746_s2] sm:$0xff] (!%p251_p2)   ;;  %v644_v2 = vmov (!%p251_p2), 0.0   ;;  %v633_v3 = vld [vmem:[%s746_s2 + $0x8] sm:$0xff] (!%p251_p2)   ;;  %vm645_vm0 = vmmov (!%p251_p2), 0   ;;  %p288_p3 = scmp.lt.s32.totalorder (!%p251_p2), %s569_s27, 1  ;;  %v646_v4 = vmov (!%p251_p2), 0  }
   0x8   : > { %254 = sbr.rel (%p251_p2) target bundleno = 471 (0x1d7), region = 44  ;;  %594 = vmatprep.subr.bf16.mxu0 (!%p251_p2), %v644_v2  ;;  %598 = vmatprep.mubr.msk.bf16.mxu0 (!%p251_p2), %vm645_vm0, %v644_v2  ;;  %v647_v5 = vmov (!%p251_p2), 0.0|0.0   ;;  %vm331_vm1 = vcmask (!%p251_p2), 261120   ;;  %v382_v9 = vld [vmem:[%s748_s4] sm:$0xff] (!%p251_p2)  ;;  %v383_v10 = vld [vmem:[%s748_s4 + $0x8] sm:$0xff] (!%p251_p2)  ;;  %v384_v12 = vld [vmem:[%s748_s4 + $0x10] sm:$0xff] (!%p251_p2) }
   0x9   : > { %595 = vmatpush3.bf16.msra.mxu0 (!%p251_p2), %v632_v1  ;;  %631 = vset.pattern.permute.xlu0 (!%p251_p2), %v646_v4  ;;  %v614_v11 = vpack.c.bf16 (!%p251_p2), %v383_v10, %v382_v9  ;;  %v385_v13 = vld [vmem:[%s748_s4 + $0x18] sm:$0xff] (!%p251_p2)  ;;  %v578_v15 = vld [vmem:[%s747_s3] ss:$0 sm:$0xff] (!%p251_p2)  ;;  %vm470_vm2 = vcmask (!%p251_p2), 7168  }
   0xa   : > { %596 = vmatprep.subr.bf16.mxu0 (!%p251_p2), %v644_v2  ;;  %613 = vmatprep.subr.bf16.mxu1 (!%p251_p2), %v647_v5  ;;  %v617_v14 = vpack.c.bf16 (!%p251_p2), %v385_v13, %v384_v12  ;;  %v582_v24 = vld [vmem:[#allocation2] ss:$0 sm:$0xff] (!%p251_p2) }
   0xb   : > { %610 = vmatprep.mubr.msk.f32.mxu1 (!%p251_p2), %vm645_vm0, %v644_v2  ;;  %615 = vmatpush3.bf16.msra.mxu1 (!%p251_p2), %v614_v11 }
   0xc   : > { %616 = vmatprep.subr.bf16.mxu1 (!%p251_p2), %v647_v5 }
   0xd   : > { %597 = vmatpush3.bf16.msra.mxu0 (!%p251_p2), %v633_v3 }
   0xf   : > { %s753_s27 = smov (!%p288_p3, %s569_s27), 1  ;;  %618 = vmatpush3.bf16.msra.mxu1 %v617_v14 }
  0x10   : > { %s705_s8 = sshll.u32 %s753_s27, 3 }
  0x11   : > { %s291_s11 = scalar_lea.vmem %s744_s0, %s705_s8  ;;  %s295_s14 = scalar_lea.vmem %s745_s1, %s705_s8 }
  0x12   : > { %v306_v6 = vld [vmem:[%s291_s11] sm:$0xff]  ;;  %s299_s28 = scalar_lea.vmem %s750_s6, %s705_s8  ;;  %s303_s30 = scalar_lea.vmem %s751_s7, %s705_s8 }
  0x13   : > { %v307_v7 = vpack.c.bf16 %v306_v6, %v306_v6  ;;  %v305_v8 = vld [vmem:[%s295_s14] sm:$0xff] }
  0x14   : > { %378 = vperm.xlu0 %631, %v305_v8  }
  0x15   : > { %599 = vmatmul.mubr.msk.bf16.vlgmr.msra.gmra.mrb[0].mxu0 %vm331_vm1, %v307_v7 }
  0x93   : > { %v379_v20 = vpop.permute.xlu0 %378 }
  0xe8   : > { %v369_v16 = vpop.f32.mrb[0].mxu0 }
  0xe9   : > { %v370_v17 = vadd.f32 %v578_v15, %v369_v16  ;;  %v600_v18 = vpop.f32.mrb[1].mxu0 }
  0xea   : > { %v372_v19 = vpop.f32.mrb[2].mxu0 }
  0xeb   : > { %v375_v21 = vmax.f32 %v370_v17, 0.0  ;;  %v601_v22 = vpop.f32.mrb[3].mxu0 }
  0xed   : > { %v381_v23 = vmul.f32 %v379_v20, %v375_v21 }
  0xef   : > { %472 = vst.msk [vmem:[%s299_s28] sm:$0xff] %vm331_vm1, %v381_v23  ;;  %611 = vmatmul.mubr.msk.f32.vlgmr.msra.gmra.mrb[0].mxu1 %vm331_vm1, %v381_v23 }
 0x1c2   : > { %v462_v25 = vpop.f32.mrb[0].mxu1 }
 0x1c3   : > { %v463_v26 = vadd.f32 %v582_v24, %v462_v25  ;;  %v612_v27 = vpop.f32.mrb[1].mxu1 }
 0x1c5   : > { %v466_v28 = vmul.f32 1.442695, %v463_v26 }
 0x1c7   : > { %634 = vpow2.f32 %v466_v28 }
 0x1d1   : > { %v635_v29 = vpop.eup %634 }
 0x1d2   : > { %v468_v30 = vmul.f32 %v635_v29, %v305_v8 }
 0x1d4   : > { %v469_v31 = vceil.f32 %v468_v30 }
 0x1d6   : > { %471 = vst.msk [vmem:[%s303_s30] sm:$0xff] %vm470_vm2, %v469_v31 }
 0x1d7 PF: > { %s20_s26 = sadd.s32 1, %s642_s26  }
 0x1d8   : > { %p17_p4 = scmp.ge.s32.totalorder %s20_s26, 4  }
 0x1da   :  { %19 = sbr.rel (!%p17_p4) target bundleno = 3 (0x3), region = 89 }

// kernel: xvits_forward.3
= control target key start
LH: loop header
LB: loop body
LE: loop exit
PB: predicated region body
PF: predicated region fallthrough
CT: control target
= control target key end

     0   :  { %s1692_s18 = smov 0   ;;  %s1840_s0 = inlined_call_operand.vmem [shape: f32[2,8,32], index: 0, kind: input, shape index: {}]   ;;  %s1841_s1 = inlined_call_operand.vmem [shape: bf16[2,32,8], index: 1, kind: input, shape index: {}]   ;;  %s1842_s2 = inlined_call_operand.vmem [shape: f32[2,32,1], index: 2, kind: input, shape index: {}]   ;;  %s1843_s3 = inlined_call_operand.vmem [shape: f32[2,32,16], index: 3, kind: input, shape index: {}]   ;;  %s1844_s4 = inlined_call_operand.vmem [shape: bf16[32,16], index: 4, kind: input, shape index: {}]   ;;  %s1845_s5 = inlined_call_operand.vmem [shape: bf16[16,16], index: 5, kind: input, shape index: {}]   ;;  %s1846_s6 = inlined_call_operand.vmem [shape: bf16[16,16], index: 6, kind: input, shape index: {}]   ;;  %s1847_s7 = inlined_call_operand.vmem [shape: f32[16,2], index: 7, kind: input, shape index: {}]   ;;  %s1848_s8 = inlined_call_operand.vmem [shape: f32[1,2], index: 8, kind: input, shape index: {}]   ;;  %s1849_s9 = inlined_call_operand.vmem [shape: f32[5,16], index: 9, kind: input, shape index: {}]   ;;  %s1850_s10 = inlined_call_operand.vmem [shape: bf16[16,16], index: 10, kind: input, shape index: {}]   ;;  %s1851_s11 = inlined_call_operand.vmem [shape: f32[2,16], index: 11, kind: input, shape index: {}]   ;;  %s1852_s12 = inlined_call_operand.vmem [shape: f32[2,32,16], index: 12, kind: output, shape index: {0}]   ;;  %s1853_s13 = inlined_call_operand.vmem [shape: f32[2,32,1], index: 13, kind: output, shape index: {1}]   ;;  %s1854_s14 = inlined_call_operand.vmem [shape: f32[2,32,1], index: 14, kind: output, shape index: {2}]   ;;  %s1855_s15 = inlined_call_operand.vmem [shape: f32[2,32,1], index: 15, kind: output, shape index: {3}]  }
   0x1 LB: > { %s1420_s19 = sadd.s32 4294967295, %s1607_s18   ;;  %p1424_p0 = scmp.ge.s32.totalorder %s1607_s18, 1  ;;  %s1607_s18 = sphi %s1692_s18, %s26_s18  }
   0x2   : > { %p473_p1 = scmp.lt.s32.totalorder %s1607_s18, 3 }
   0x4   : > { %p474_p2 = pnand %p1424_p0, %p473_p1 }
   0x5   : > { %p550_p3 = scmp.lt.s32.totalorder (!%p474_p2), %s1420_s19, 1  ;;  %v1572_v0 = vld [vmem:[%s1844_s4] sm:$0xff] (!%p474_p2)   ;;  %vm617_vm0 = vcmask (!%p474_p2), 1043456   ;;  %vm610_vm1 = vcmask (!%p474_p2), 64512   ;;  %v1573_v6 = vld [vmem:[%s1844_s4 + $0x8] sm:$0xff] (!%p474_p2)   ;;  %v1609_v7 = vmov (!%p474_p2), 0  }
   0x6   : > { %477 = sbr.rel (%p474_p2) target bundleno = 962 (0x3c2), region = 68  ;;  %1506 = vmatprep.subr.bf16.mxu1 (!%p474_p2), %v1572_v0  ;;  %1558 = vset.pattern.permute.xlu0 (!%p474_p2), %v1609_v7  ;;  %vm693_vm2 = vcmask (!%p474_p2), 261120   ;;  %v1574_v18 = vld [vmem:[%s1845_s5] sm:$0xff] (!%p474_p2)   ;;  %v919_v21 = vld [vmem:[%s1847_s7 + $0x8] sm:$0xff] (!%p474_p2)  ;;  %vm792_vm3 = vcmask (!%p474_p2), 130048   ;;  %s1611_s30 = smov (!%p474_p2), 127  }
   0x7   : > { %1507 = vmatpush3.bf16.msra.mxu1 (!%p474_p2), %v1572_v0  ;;  %1559 = vset.pattern.permute.xlu1 (!%p474_p2), %v1609_v7  ;;  %v1575_v19 = vld [vmem:[%s1846_s6] sm:$0xff] (!%p474_p2)   ;;  %vm1060_vm8 = vcmask (!%p474_p2), 7168  }
   0x8   : > { %1508 = vmatprep.subr.bf16.mxu1 (!%p474_p2), %v1573_v6  ;;  %v918_v20 = vld [vmem:[%s1847_s7] sm:$0xff] (!%p474_p2) }
   0x9   : > { %v1542_v22 = vpack.c.bf16 (!%p474_p2), %v919_v21, %v918_v20  ;;  %v1444_v23 = vld [vmem:[%s1849_s9] ss:$0 sm:$0xff] (!%p474_p2)  ;;  %v1453_v47 = vld [vmem:[%s1849_s9 + $0x2] ss:$0 sm:$0xff] (!%p474_p2) }
   0xa   : > { %v1576_v46 = vld [vmem:[%s1850_s10] sm:$0xff] (!%p474_p2)  }
   0xb   : > { %1509 = vmatpush3.bf16.msra.mxu1 (!%p474_p2), %v1573_v6 }
   0xc   : > { %1520 = vmatprep.subr.bf16.mxu1 (!%p474_p2), %v1575_v19 }
   0xd   : > { %s1857_s19 = smov (!%p550_p3, %s1420_s19), 1 }
   0xe   : > { %s1425_s22 = sshll.u32 %s1857_s19, 3  ;;  %s1471_s26 = sshll.u32 %s1857_s19, 4 }
   0xf   : > { %s553_s25 = scalar_lea.vmem %s1840_s0, %s1425_s22  ;;  %s558_s29 = scalar_lea.vmem %s1841_s1, %s1471_s26 }
  0x10   : > { %v598_v1 = vld [vmem:[%s553_s25] sm:$0xff]  ;;  %v1571_v5 = vld [vmem:[%s558_s29 + $0x8] sm:$0xff]   ;;  %s1712_s17 = sshll.u32 %s1857_s19, 5 }
  0x11   : > { %v599_v2 = vpack.c.bf16 %v598_v1, %v598_v1  ;;  %v1570_v3 = vld [vmem:[%s558_s29] sm:$0xff]   ;;  %s563_s22 = scalar_lea.vmem %s1842_s2, %s1712_s17  ;;  %s1773_s29 = scalar_lea.vmem %s1843_s3, %s1712_s17 }
  0x12   : > { %1502 = vmatprep.mubr.msk.bf16.mxu0 %vm610_vm1, %v1570_v3  ;;  %v590_v8 = vld [vmem:[%s563_s22] sm:$0xff]  ;;  %v592_v9 = vld [vmem:[%s563_s22 + $0x10] sm:$0xff]  ;;  %v591_v10 = vld [vmem:[%s563_s22 + $0x8] sm:$0xff]  ;;  %s578_s21 = scalar_lea.vmem %s1853_s13, %s1712_s17  ;;  %s583_s27 = scalar_lea.vmem %s1854_s14, %s1712_s17 }
  0x13   : > { %1546 = vmatprep.subr.msk.bf16.mxu0 %vm617_vm0, %v599_v2  ;;  %v619_v4 = vsel %vm617_vm0, %v599_v2, 0  ;;  %755 = vperm.xlu0 %1558, %v590_v8   ;;  %v593_v11 = vld [vmem:[%s563_s22 + $0x18] sm:$0xff]  ;;  %v1457_v2 = vld [vmem:[%s1848_s8] ss:$0 sm:$0xff]  ;;  %v1075_v21 = vld [vmem:[%s1773_s29 + $0x10] sm:$0xff]  ;;  %s573_s24 = scalar_lea.vmem %s1852_s12, %s1712_s17 }
  0x14   : > { %1501 = vmatpush3.bf16.msra.mxu0 %v619_v4  ;;  %765 = vperm.xlu1 %1559, %v592_v9   ;;  %v1449_v9 = vld [vmem:[%s1849_s9 + $0x1] ss:$0 sm:$0xff] }
  0x15   : > { %1514 = vmatprep.subr.bf16.mxu0 %v1574_v18 }
  0x17   : > { %1503 = vmatmul.mubr.msk.bf16.vlgmr.msra.gmra.mrb[0].mxu0 %vm610_vm1, %v1571_v5  ;;  %760 = vperm.xlu0 %1558, %v591_v10  }
  0x18   : > { %770 = vperm.xlu1 %1559, %v593_v11   ;;  %1515 = vmatpush3.bf16.msra.mxu0 %v1574_v18  ;;  %v1610_v11 = vmov 0.0  }
  0x19   : > { %1543 = vmatprep.subr.bf16.mxu0 %v1542_v22 }
  0x92   : > { %v1735_v26 = vpop.permute.xlu0 %755 }
  0x93   : > { %v1733_v24 = vpop.permute.xlu1 %765 }
  0x96   : > { %v1740_v40 = vpop.permute.xlu0 %760 }
  0x97   : > { %v1737_v38 = vpop.permute.xlu1 %770 }
  0xea   : > { %v1504_v12 = vpop.f32.mrb[0].mxu0 }
  0xeb   : > { %v655_v13 = vpop.f32.mrb[1].mxu0 }
  0xec   : > { %v1505_v14 = vpop.f32.mrb[2].mxu0 }
  0xed   : > { %v671_v15 = vpack.c.bf16 %v1505_v14, %v1504_v12  ;;  %v658_v16 = vpop.f32.mrb[3].mxu0 }
  0xee   : > { %v670_v17 = vpack.c.bf16 %v658_v16, %v655_v13 }
  0xf0   : > { %1510 = vmatprep.mubr.msk.bf16.mxu1 %vm693_vm2, %v670_v17 }
  0xf1   : > { %1511 = vmatmul.mubr.msk.bf16.vlgmr.msra.gmra.mrb[0].mxu1 %vm693_vm2, %v671_v15 }
  0xf2   : > { %1521 = vmatpush3.bf16.msra.mxu1 %v1575_v19 }
  0xf3   : > { %1536 = vmatprep.subr.bf16.mxu1 %v1576_v46 }
 0x1c4   : > { %v1512_v25 = vpop.f32.mrb[0].mxu1 }
 0x1c5   : > { %v743_v27 = vadd.f32 %v1512_v25, %v1444_v23  ;;  %v734_v28 = vpop.f32.mrb[1].mxu1  ;;  %v1073_v25 = vld [vmem:[%s1773_s29] sm:$0xff] }
 0x1c6   : > { %v735_v29 = vadd.f32 %v1444_v23, %v734_v28  ;;  %v1513_v30 = vpop.f32.mrb[2].mxu1 }
 0x1c7   : > { %v751_v31 = vmax.f32 %v743_v27, 0.0  ;;  %v746_v32 = vadd.f32 %v1513_v30, %v1444_v23  ;;  %v737_v33 = vpop.f32.mrb[3].mxu1 }
 0x1c8   : > { %v749_v34 = vmax.f32 %v735_v29, 0.0  ;;  %v738_v35 = vadd.f32 %v1444_v23, %v737_v33 }
 0x1c9   : > { %v752_v36 = vmax.f32 %v746_v32, 0.0  ;;  %v775_v39 = vmul.f32 %v1733_v24, %v751_v31  ;;  %v1076_v31 = vld [vmem:[%s1773_s29 + $0x18] sm:$0xff] }
 0x1ca   : > { %v750_v37 = vmax.f32 %v738_v35, 0.0  ;;  %v773_v42 = vmul.f32 %v1735_v26, %v749_v34 }
 0x1cb   : > { %v776_v41 = vmul.f32 %v1737_v38, %v752_v36 }
 0x1cc   : > { %v774_v43 = vmul.f32 %v1740_v40, %v750_v37  ;;  %v1074_v37 = vld [vmem:[%s1773_s29 + $0x8] sm:$0xff] }
 0x1cd   : > { %v778_v44 = vpack.c.bf16 %v776_v41, %v775_v39 }
 0x1ce   : > { %v777_v45 = vpack.c.bf16 %v774_v43, %v773_v42 }
 0x1d0   : > { %1516 = vmatprep.mubr.msk.bf16.mxu0 %vm792_vm3, %v777_v45  ;;  %1522 = vmatprep.mubr.msk.bf16.mxu1 %vm792_vm3, %v777_v45 }
 0x1d1   : > { %1517 = vmatmul.mubr.msk.bf16.vlgmr.msra.gmra.mrb[4].mxu0 %vm792_vm3, %v778_v44  ;;  %1523 = vmatmul.mubr.msk.bf16.vlgmr.msra.gmra.mrb[4].mxu1 %vm792_vm3, %v778_v44 }
 0x1d2   : > { %1545 = vmatpush3.bf16.msra.mxu0 %v1542_v22  ;;  %1530 = vmatprep.mubr.msk.f32.mxu0 %vm792_vm3, %v773_v42 }
 0x1d3   : > { %1537 = vmatpush3.bf16.msra.mxu1 %v1576_v46 }
 0x1d9   : > { %1531 = vmatmul.mubr.msk.f32.vlgmr.msra.gmra.mrb[8].mxu0 %vm792_vm3, %v774_v43 }
 0x1da   : > { %1533 = vmatprep.mubr.msk.f32.mxu0 %vm792_vm3, %v775_v39 }
 0x1dd   : > { %1534 = vmatmul.mubr.msk.f32.gmra.mrb[10].mxu0 %vm792_vm3, %v776_v41 }
 0x2a4   : > { %v1518_v48 = vpop.f32.mrb[4].mxu0  ;;  %v1524_v49 = vpop.f32.mrb[4].mxu1 }
 0x2a5   : > { %v908_v50 = vadd.f32 %v1524_v49, %v1453_v47  ;;  %v833_v51 = vpop.f32.mrb[5].mxu0  ;;  %v899_v52 = vpop.f32.mrb[5].mxu1  ;;  %v842_v18 = vadd.f32 %v1518_v48, %v1449_v9 }
 0x2a6   : > { %v900_v53 = vadd.f32 %v1453_v47, %v899_v52  ;;  %v1519_v54 = vpop.f32.mrb[6].mxu0  ;;  %v1525_v55 = vpop.f32.mrb[6].mxu1  ;;  %v834_v22 = vadd.f32 %v1449_v9, %v833_v51  ;;  %v1462_v51 = vld [vmem:[%s1849_s9 + $0x3] ss:$0 sm:$0xff] }
 0x2a7   : > { %v916_v56 = vmul.f32 %v908_v50, %v1733_v24  ;;  %v911_v57 = vadd.f32 %v1525_v55, %v1453_v47  ;;  %v836_v58 = vpop.f32.mrb[7].mxu0  ;;  %v902_v59 = vpop.f32.mrb[7].mxu1  ;;  %v845_v27 = vadd.f32 %v1519_v54, %v1449_v9  ;;  %v850_v35 = vmul.f32 %v842_v18, %v1733_v24 }
 0x2a8   : > { %v914_v60 = vmul.f32 %v900_v53, %v1735_v26  ;;  %v903_v61 = vadd.f32 %v1453_v47, %v902_v59  ;;  %v837_v32 = vadd.f32 %v1449_v9, %v836_v58  ;;  %v848_v42 = vmul.f32 %v834_v22, %v1735_v26 }
 0x2a9   : > { %v1081_v62 = vmul.f32 1.442695, %v916_v56  ;;  %v917_v63 = vmul.f32 %v911_v57, %v1737_v38  ;;  %v851_v46 = vmul.f32 %v845_v27, %v1737_v38  ;;  %v1463_v57 = vld [vmem:[%s1849_s9 + $0x4] ss:$0 sm:$0xff] }
 0x2aa   : > { %v1077_v0 = vmul.f32 1.442695, %v914_v60  ;;  %v915_v1 = vmul.f32 %v903_v61, %v1740_v40  ;;  %v849_v49 = vmul.f32 %v837_v32, %v1740_v40 }
 0x2ab   : > { %1577 = vpow2.f32 %v1081_v62  ;;  %v1083_v3 = vmul.f32 1.442695, %v917_v63 }
 0x2ac   : > { %1579 = vpow2.f32 %v1077_v0  ;;  %v1079_v4 = vmul.f32 1.442695, %v915_v1  ;;  %v1532_v5 = vpop.f32.mrb[8].mxu0 }
 0x2ad   : > { %1581 = vpow2.f32 %v1083_v3  ;;  %v1011_v6 = vadd.f32 %v1532_v5, %v1457_v2  ;;  %v1005_v7 = vpop.f32.mrb[9].mxu0 }
 0x2ae   : > { %1583 = vpow2.f32 %v1079_v4  ;;  %v1006_v8 = vadd.f32 %v1457_v2, %v1005_v7 }
 0x2af   : > { %v1026_v10 = vmul.f32 1.442695, %v1011_v6  ;;  %vm1033_vm4 = vcmp.gt.f32.partialorder %v1011_v6, 0.0 }
 0x2b0   : > { %v1037_v12 = vsel %vm1033_vm4, 1.0, %v1610_v11  ;;  %v1024_v13 = vmul.f32 1.442695, %v1006_v8  ;;  %vm1032_vm5 = vcmp.gt.f32.partialorder %v1006_v8, 0.0  ;;  %v1535_v14 = vpop.f32.mrb[10].mxu0 }
 0x2b1   : > { %1585 = vpow2.f32 %v1026_v10  ;;  %v1036_v15 = vsel %vm1032_vm5, 1.0, %v1610_v11  ;;  %v1021_v16 = vadd.f32 %v1535_v14, %v1457_v2  ;;  %v1015_v17 = vpop.f32.mrb[11].mxu0 }
 0x2b2   : > { %1587 = vpow2.f32 %v1024_v13  ;;  %v1016_v19 = vadd.f32 %v1457_v2, %v1015_v17  ;;  %v1560_v20 = vpack.i.bf16 %v1037_v12, %v1036_v15 }
 0x2b3   : > { %v1030_v23 = vmul.f32 1.442695, %v1021_v16  ;;  %vm1035_vm6 = vcmp.gt.f32.partialorder %v1021_v16, 0.0 }
 0x2b4   : > { %v1039_v28 = vsel %vm1035_vm6, 1.0, %v1610_v11  ;;  %v1028_v29 = vmul.f32 1.442695, %v1016_v19  ;;  %vm1034_vm7 = vcmp.gt.f32.partialorder %v1016_v19, 0.0  ;;  %1561 = vrot.lane.b32.xlu0 %v1560_v20, %s1611_s30 }
 0x2b5   : > { %v1578_v30 = vpop.eup %1577  ;;  %1589 = vpow2.f32 %v1030_v23  ;;  %v1038_v33 = vsel %vm1034_vm7, 1.0, %v1610_v11  ;;  %v1464_v23 = vld [vmem:[%s1851_s11] ss:$0 sm:$0xff] }
 0x2b6   : > { %v1580_v34 = vpop.eup %1579  ;;  %v1087_v36 = vmul.f32 %v1578_v30, %v1075_v21  ;;  %1591 = vpow2.f32 %v1028_v29  ;;  %v1565_v39 = vpack.i.bf16 %v1039_v28, %v1038_v33  ;;  %v1468_v30 = vld [vmem:[%s1851_s11 + $0x1] ss:$0 sm:$0xff] }
 0x2b7   : > { %v1582_v41 = vpop.eup %1581  ;;  %v1085_v43 = vmul.f32 %v1580_v34, %v1073_v25 }
 0x2b8   : > { %v1584_v44 = vpop.eup %1583  ;;  %v1091_v45 = vadd.f32 %v1087_v36, %v850_v35  ;;  %v1088_v47 = vmul.f32 %v1582_v41, %v1076_v31  ;;  %1566 = vrot.lane.b32.xlu1 %v1565_v39, %s1611_s30  ;;  %s588_s30 = scalar_lea.vmem %s1855_s15, %s1712_s17 }
 0x2b9   : > { %v1089_v48 = vadd.f32 %v1085_v43, %v848_v42  ;;  %v1086_v50 = vmul.f32 %v1584_v44, %v1074_v37 }
 0x2ba   : > { %v1095_v52 = vmul.f32 %v1091_v45, %v1733_v24  ;;  %v1092_v53 = vadd.f32 %v1088_v47, %v851_v46 }
 0x2bb   : > { %v1586_v54 = vpop.eup %1585  ;;  %v1090_v55 = vadd.f32 %v1086_v50, %v849_v49  ;;  %v1093_v56 = vmul.f32 %v1089_v48, %v1735_v26 }
 0x2bc   : > { %v1588_v58 = vpop.eup %1587  ;;  %v1096_v59 = vmul.f32 %v1092_v53, %v1737_v38  ;;  %1062 = vst.msk [vmem:[%s578_s21 + $0x8] sm:$0xff] %vm1060_vm8, %v1586_v54  ;;  %v1104_v60 = vsub.f32 %v1095_v52, %v1462_v51 }
 0x2bd   : > { %1061 = vst.msk [vmem:[%s578_s21] sm:$0xff] %vm1060_vm8, %v1588_v58  ;;  %v1094_v61 = vmul.f32 %v1090_v55, %v1740_v40  ;;  %v1102_v62 = vsub.f32 %v1093_v56, %v1462_v51 }
 0x2be   : > { %v1105_v63 = vsub.f32 %v1096_v59, %v1462_v51  ;;  %v1113_v0 = vmul.f32 %v1463_v57, %v1104_v60 }
 0x2bf   : > { %v1590_v1 = vpop.eup %1589  ;;  %v1103_v2 = vsub.f32 %v1094_v61, %v1462_v51  ;;  %v1111_v3 = vmul.f32 %v1463_v57, %v1102_v62 }
 0x2c0   : > { %v1592_v4 = vpop.eup %1591  ;;  %1064 = vst.msk [vmem:[%s578_s21 + $0x18] sm:$0xff] %vm1060_vm8, %v1590_v1  ;;  %v1114_v5 = vmul.f32 %v1463_v57, %v1105_v63  ;;  %v1117_v7 = vmul.f32 %v1113_v0, %v1733_v24 }
 0x2c1   : > { %1063 = vst.msk [vmem:[%s578_s21 + $0x10] sm:$0xff] %vm1060_vm8, %v1592_v4  ;;  %v1112_v6 = vmul.f32 %v1463_v57, %v1103_v2  ;;  %v1115_v9 = vmul.f32 %v1111_v3, %v1735_v26 }
 0x2c2   : > { %v1118_v8 = vmul.f32 %v1114_v5, %v1737_v38 }
 0x2c3   : > { %v1116_v10 = vmul.f32 %v1112_v6, %v1740_v40 }
 0x2c4   : > { %v1120_v11 = vpack.c.bf16 %v1118_v8, %v1117_v7 }
 0x2c5   : > { %v1119_v12 = vpack.c.bf16 %v1116_v10, %v1115_v9 }
 0x2c7   : > { %1538 = vmatprep.mubr.msk.bf16.mxu1 %vm792_vm3, %v1119_v12 }
 0x2c8   : > { %1539 = vmatmul.mubr.msk.bf16.vlgmr.msra.gmra.mrb[8].mxu1 %vm792_vm3, %v1120_v11 }
 0x326   : > { %v1562_v13 = vpop.permute.xlu0 %1561 }
 0x327   : > { %v1564_v14 = vunpack.i.h.bf16 %v1562_v13  ;;  %v1563_v15 = vunpack.i.l.bf16 %v1562_v13 }
 0x329   : > { %v1057_v24 = vmul.f32 %v1586_v54, %v1564_v14  ;;  %1066 = vst.msk [vmem:[%s583_s27 + $0x8] sm:$0xff] %vm1060_vm8, %v1564_v14  ;;  %v1056_v26 = vmul.f32 %v1588_v58, %v1563_v15  ;;  %1065 = vst.msk [vmem:[%s583_s27] sm:$0xff] %vm1060_vm8, %v1563_v15 }
 0x32a   : > { %v1567_v38 = vpop.permute.xlu1 %1566 }
 0x32b   : > { %1070 = vst.msk [vmem:[%s588_s30 + $0x8] sm:$0xff] %vm1060_vm8, %v1057_v24  ;;  %1069 = vst.msk [vmem:[%s588_s30] sm:$0xff] %vm1060_vm8, %v1056_v26  ;;  %v1569_v40 = vunpack.i.h.bf16 %v1567_v38  ;;  %v1568_v16 = vunpack.i.l.bf16 %v1567_v38  ;;  %1131 = vperm.xlu1 %1559, %v1057_v24   ;;  %1126 = vperm.xlu0 %1558, %v1056_v26  }
 0x32d   : > { %v1059_v17 = vmul.f32 %v1590_v1, %v1569_v40  ;;  %1068 = vst.msk [vmem:[%s583_s27 + $0x18] sm:$0xff] %vm1060_vm8, %v1569_v40  ;;  %v1058_v18 = vmul.f32 %v1592_v4, %v1568_v16  ;;  %1067 = vst.msk [vmem:[%s583_s27 + $0x10] sm:$0xff] %vm1060_vm8, %v1568_v16 }
 0x32f   : > { %1072 = vst.msk [vmem:[%s588_s30 + $0x18] sm:$0xff] %vm1060_vm8, %v1059_v17  ;;  %1071 = vst.msk [vmem:[%s588_s30 + $0x10] sm:$0xff] %vm1060_vm8, %v1058_v18  ;;  %1141 = vperm.xlu1 %1559, %v1059_v17   ;;  %1136 = vperm.xlu0 %1558, %v1058_v18  }
 0x39b   : > { %v1540_v19 = vpop.f32.mrb[8].mxu1 }
 0x39c   : > { %v1198_v20 = vpop.f32.mrb[9].mxu1 }
 0x39d   : > { %v1541_v21 = vpop.f32.mrb[10].mxu1 }
 0x39e   : > { %v1201_v22 = vpop.f32.mrb[11].mxu1 }
 0x3aa   : > { %v1132_v25 = vpop.permute.xlu1 %1131  ;;  %v1127_v27 = vpop.permute.xlu0 %1126 }
 0x3ab   : > { %v1149_v28 = vmul.f32 %v1464_v23, %v1132_v25  ;;  %v1148_v29 = vmul.f32 %v1464_v23, %v1127_v27 }
 0x3ad   : > { %v1202_v31 = vadd.f32 %v1201_v22, %v1149_v28  ;;  %v1199_v32 = vadd.f32 %v1198_v20, %v1148_v29 }
 0x3ae   : > { %v1142_v33 = vpop.permute.xlu1 %1141  ;;  %v1137_v34 = vpop.permute.xlu0 %1136 }
 0x3af   : > { %v1219_v35 = vadd.f32 %v1468_v30, %v1202_v31  ;;  %v1218_v36 = vadd.f32 %v1468_v30, %v1199_v32  ;;  %v1151_v37 = vmul.f32 %v1464_v23, %v1142_v33  ;;  %v1150_v39 = vmul.f32 %v1464_v23, %v1137_v34 }
 0x3b1   : > { %1593 = vtanh.f32 %v1219_v35  ;;  %v1210_v41 = vadd.f32 %v1541_v21, %v1151_v37  ;;  %v1207_v42 = vadd.f32 %v1540_v19, %v1150_v39 }
 0x3b2   : > { %1595 = vtanh.f32 %v1218_v36 }
 0x3b3   : > { %v1221_v43 = vadd.f32 %v1468_v30, %v1210_v41  ;;  %v1220_v44 = vadd.f32 %v1468_v30, %v1207_v42 }
 0x3b5   : > { %1597 = vtanh.f32 %v1221_v43 }
 0x3b6   : > { %1599 = vtanh.f32 %v1220_v44 }
 0x3bb   : > { %v1594_v45 = vpop.eup %1593 }
 0x3bc   : > { %v1596_v46 = vpop.eup %1595  ;;  %1227 = vst.msk [vmem:[%s573_s24 + $0x8] sm:$0xff] %vm792_vm3, %v1594_v45 }
 0x3bd   : > { %1226 = vst.msk [vmem:[%s573_s24] sm:$0xff] %vm792_vm3, %v1596_v46 }
 0x3bf   : > { %v1598_v47 = vpop.eup %1597 }
 0x3c0   : > { %v1600_v48 = vpop.eup %1599  ;;  %1229 = vst.msk [vmem:[%s573_s24 + $0x18] sm:$0xff] %vm792_vm3, %v1598_v47 }
 0x3c1   : > { %1228 = vst.msk [vmem:[%s573_s24 + $0x10] sm:$0xff] %vm792_vm3, %v1600_v48 }
 0x3c2 PF: > { %s26_s18 = sadd.s32 1, %s1607_s18  }
 0x3c3   : > { %p23_p4 = scmp.ge.s32.totalorder %s26_s18, 4  }
 0x3c5   :  { %25 = sbr.rel (!%p23_p4) target bundleno = 1 (0x1), region = 143 }

</bundles_post_ra>
